<compile_context>
chip_gen: v7x
topology: tpu7x:2x2x1
jax: 0.10.0
libtpu: 0.0.40
codegen_flags: <defaults>
</compile_context>

<pallas_src>
import jax
import jax.numpy as jnp
from jax.experimental import pallas as pl
from jax.experimental.pallas import tpu as pltpu

IN_FEATURES = 784
HIDDEN = 128
OUT_FEATURES = 10
OUT_PADDED = 128     # lane-dense output width
NEG_BIG = -1e30      # pad-column bias (f32): exp(pad - max) == 0


def _round_up(n, m):
    return ((n + m - 1) // m) * m


def mlp_kernel(x_ref, w1_ref, b1_ref, w2_ref, b2_ref, w3_ref, b3_ref, o_ref):
    # x tile: (tile_b, 784) f32 straight from HBM; cast to bf16 for the MXU.
    x = x_ref[...].astype(jnp.bfloat16)

    # hidden_layer: 784 -> 128, ReLU. f32 accumulation.
    h = jnp.dot(x, w1_ref[...], preferred_element_type=jnp.float32) + b1_ref[...]
    h = jnp.maximum(h, 0.0)

    # hidden_layer2 applied twice (shared weights), ReLU each time.
    w2 = w2_ref[...]
    b2 = b2_ref[...]
    h = jnp.dot(h.astype(jnp.bfloat16), w2, preferred_element_type=jnp.float32) + b2
    h = jnp.maximum(h, 0.0)
    h = jnp.dot(h.astype(jnp.bfloat16), w2, preferred_element_type=jnp.float32) + b2
    h = jnp.maximum(h, 0.0)

    # output_layer: 128 -> 128 (10 real cols + 118 pad cols with bias -1e30).
    logits = (jnp.dot(h.astype(jnp.bfloat16), w3_ref[...],
                      preferred_element_type=jnp.float32) + b3_ref[...])

    # Numerically stable softmax over the lane-dense 128-wide tile.
    # Pad columns: exp(-1e30 - m) underflows to exactly 0 in f32.
    m = jnp.max(logits, axis=1, keepdims=True)
    e = jnp.exp(logits - m)
    denom = jnp.sum(e, axis=1, keepdims=True)
    # Exact divide -> row sums are 1 to f32 precision (approx reciprocal was
    # the source of the previous row-sum failure).
    o_ref[...] = e / denom


def neural_network_forward(x, w1, b1, w2, b2, w3, b3, *, tile_b=1024):
    """x: (B, 784) f32. Weights stored as [in, out] (transpose of nn.Linear)."""
    B = x.shape[0]

    # Tile selection: big tiles amortize the ~0.35 us per-step overhead, but
    # keep >= 2 grid steps for large batches so both v7x TensorCores get work.
    tile_b = int(tile_b)
    if B >= 512:
        tile_b = min(tile_b, _round_up(pl.cdiv(B, 2), 256))
    tile_b = max(8, min(tile_b, _round_up(B, 8)))
    grid = (pl.cdiv(B, tile_b),)

    # ---- Weight/bias prep (tiny, done once per call) ----
    w1b = w1.astype(jnp.bfloat16)
    w2b = w2.astype(jnp.bfloat16)
    # w3/b3: pad output dim 10 -> 128 (zero weights, -1e30 bias on pad cols).
    w3p = jnp.zeros((HIDDEN, OUT_PADDED), jnp.float32).at[:, :OUT_FEATURES].set(w3)
    w3p = w3p.astype(jnp.bfloat16)
    b3p = jnp.full((1, OUT_PADDED), NEG_BIG, jnp.float32).at[:, :OUT_FEATURES].set(b3)
    b1f = b1.astype(jnp.float32).reshape(1, HIDDEN)
    b2f = b2.astype(jnp.float32).reshape(1, HIDDEN)

    flops = 2 * B * (IN_FEATURES * HIDDEN + 3 * HIDDEN * HIDDEN)
    bytes_accessed = (B * IN_FEATURES * 4 + B * OUT_PADDED * 4
                      + (IN_FEATURES + 2 * HIDDEN) * HIDDEN * 2)

    out = pl.pallas_call(
        mlp_kernel,
        out_shape=jax.ShapeDtypeStruct((B, OUT_PADDED), jnp.float32),
        grid_spec=pltpu.PrefetchScalarGridSpec(
            num_scalar_prefetch=0,
            grid=grid,
            in_specs=[
                pl.BlockSpec((tile_b, IN_FEATURES), lambda i: (i, 0)),   # x tile
                pl.BlockSpec((IN_FEATURES, HIDDEN), lambda i: (0, 0)),   # w1 resident
                pl.BlockSpec((1, HIDDEN), lambda i: (0, 0)),             # b1
                pl.BlockSpec((HIDDEN, HIDDEN), lambda i: (0, 0)),        # w2
                pl.BlockSpec((1, HIDDEN), lambda i: (0, 0)),             # b2
                pl.BlockSpec((HIDDEN, OUT_PADDED), lambda i: (0, 0)),    # w3 (padded)
                pl.BlockSpec((1, OUT_PADDED), lambda i: (0, 0)),         # b3 (padded)
            ],
            out_specs=pl.BlockSpec((tile_b, OUT_PADDED), lambda i: (i, 0)),
        ),
        compiler_params=pltpu.CompilerParams(
            dimension_semantics=("parallel",),
            vmem_limit_bytes=32 * 1024 * 1024,
        ),
        cost_estimate=pl.CostEstimate(
            flops=flops, transcendentals=B * OUT_PADDED,
            bytes_accessed=bytes_accessed),
    )(x, w1b, b1f, w2b, b2f, w3p, b3p)

    # TODO(synk): in production, return the padded (B, 128) block and fuse the
    # column slice into the consumer to avoid this extra read pass.
    return out[:, :OUT_FEATURES]


def init_params(key):
    # Deterministic init mimicking nn.Linear's U(-1/sqrt(fan_in), 1/sqrt(fan_in)).
    k1, k2, k3, k4, k5, k6 = jax.random.split(key, 6)

    def lin(kw, kb, fan_in, fan_out):
        bound = 1.0 / jnp.sqrt(fan_in)
        w = jax.random.uniform(kw, (fan_in, fan_out), jnp.float32, -bound, bound)
        b = jax.random.uniform(kb, (1, fan_out), jnp.float32, -bound, bound)
        return w, b

    w1, b1 = lin(k1, k2, IN_FEATURES, HIDDEN)
    w2, b2 = lin(k3, k4, HIDDEN, HIDDEN)
    w3, b3 = lin(k5, k6, HIDDEN, OUT_FEATURES)
    return w1, b1, w2, b2, w3, b3


def reference_forward(x, w1, b1, w2, b2, w3, b3):
    # Mirrors the kernel numerics: bf16 matmul operands, f32 accumulation,
    # f32 elementwise + exact softmax.
    xb = x.astype(jnp.bfloat16)
    w1b, w2b, w3b = (w.astype(jnp.bfloat16) for w in (w1, w2, w3))
    h = jnp.maximum(jnp.dot(xb, w1b, preferred_element_type=jnp.float32) + b1, 0.0)
    h = jnp.maximum(
        jnp.dot(h.astype(jnp.bfloat16), w2b, preferred_element_type=jnp.float32) + b2, 0.0)
    h = jnp.maximum(
        jnp.dot(h.astype(jnp.bfloat16), w2b, preferred_element_type=jnp.float32) + b2, 0.0)
    logits = jnp.dot(h.astype(jnp.bfloat16), w3b, preferred_element_type=jnp.float32) + b3
    return jax.nn.softmax(logits, axis=1)


if __name__ == "__main__":
    key = jax.random.PRNGKey(0)
    kx, kp = jax.random.split(key)
    B = 8
    x = jax.random.normal(kx, (B, IN_FEATURES), dtype=jnp.float32)
    params = init_params(kp)

    out = neural_network_forward(x, *params)
    out = jax.block_until_ready(out)

    ref = reference_forward(x, *params)
    assert out.shape == (B, OUT_FEATURES)
    assert jnp.allclose(out, ref, atol=2e-3, rtol=2e-3), float(jnp.max(jnp.abs(out - ref)))
    assert jnp.allclose(jnp.sum(out, axis=1), 1.0, atol=1e-3)

    print("KERNEL_OK")
</pallas_src>

<mosaic_0001>
module attributes {stable_mosaic.version = 11 : i64} {
  func.func @mlp_kernel(%arg0: i32, %arg1: memref<8x784xf32, #tpu.memory_space<vmem>>, %arg2: memref<784x128xbf16, #tpu.memory_space<vmem>>, %arg3: memref<1x128xf32, #tpu.memory_space<vmem>>, %arg4: memref<128x128xbf16, #tpu.memory_space<vmem>>, %arg5: memref<1x128xf32, #tpu.memory_space<vmem>>, %arg6: memref<128x128xbf16, #tpu.memory_space<vmem>>, %arg7: memref<1x128xf32, #tpu.memory_space<vmem>>, %arg8: memref<8x128xf32, #tpu.memory_space<vmem>>) attributes {dimension_semantics = [#tpu.dimension_semantics<parallel>], iteration_bounds = array<i64: 1>, scalar_prefetch = 0 : i64, scratch_operands = 0 : i64, tpu.core_type = #tpu.core_type<tc>, window_params = [{transform_indices = @transform_0, window_bounds = array<i64: 8, 784>}, {pipeline_mode = #tpu.pipeline_mode<synchronous>, transform_indices = @transform_1, window_bounds = array<i64: 784, 128>}, {pipeline_mode = #tpu.pipeline_mode<synchronous>, transform_indices = @transform_2, window_bounds = array<i64: 1, 128>}, {pipeline_mode = #tpu.pipeline_mode<synchronous>, transform_indices = @transform_3, window_bounds = array<i64: 128, 128>}, {pipeline_mode = #tpu.pipeline_mode<synchronous>, transform_indices = @transform_4, window_bounds = array<i64: 1, 128>}, {pipeline_mode = #tpu.pipeline_mode<synchronous>, transform_indices = @transform_5, window_bounds = array<i64: 128, 128>}, {pipeline_mode = #tpu.pipeline_mode<synchronous>, transform_indices = @transform_6, window_bounds = array<i64: 1, 128>}, {transform_indices = @transform_7, window_bounds = array<i64: 8, 128>}]} {
    %c0 = arith.constant 0 : index
    %c0_0 = arith.constant 0 : index
    %0 = vector.load %arg1[%c0, %c0_0] : memref<8x784xf32, #tpu.memory_space<vmem>>, vector<8x784xf32>
    %1 = arith.truncf %0 : vector<8x784xf32> to vector<8x784xbf16>
    %c0_1 = arith.constant 0 : index
    %c0_2 = arith.constant 0 : index
    %2 = vector.load %arg2[%c0_1, %c0_2] : memref<784x128xbf16, #tpu.memory_space<vmem>>, vector<784x128xbf16>
    %cst = arith.constant dense<0.000000e+00> : vector<8x128xf32>
    %3 = tpu.matmul %1, %2, %cst {dimension_numbers = #tpu.dot_dimension_numbers<[1], [0], [0], [1], [0, 0, 1, 1], [], []>} : vector<8x784xbf16>, vector<784x128xbf16>, vector<8x128xf32> -> vector<8x128xf32>
    %c0_3 = arith.constant 0 : index
    %c0_4 = arith.constant 0 : index
    %4 = vector.load %arg3[%c0_3, %c0_4] : memref<1x128xf32, #tpu.memory_space<vmem>>, vector<1x128xf32>
    %5 = vector.broadcast %4 : vector<1x128xf32> to vector<8x128xf32>
    %6 = arith.addf %3, %5 : vector<8x128xf32>
    %cst_5 = arith.constant 0.000000e+00 : f32
    %7 = vector.broadcast %cst_5 : f32 to vector<8x128xf32>
    %8 = arith.maximumf %6, %7 : vector<8x128xf32>
    %c0_6 = arith.constant 0 : index
    %c0_7 = arith.constant 0 : index
    %9 = vector.load %arg4[%c0_6, %c0_7] : memref<128x128xbf16, #tpu.memory_space<vmem>>, vector<128x128xbf16>
    %c0_8 = arith.constant 0 : index
    %c0_9 = arith.constant 0 : index
    %10 = vector.load %arg5[%c0_8, %c0_9] : memref<1x128xf32, #tpu.memory_space<vmem>>, vector<1x128xf32>
    %11 = arith.truncf %8 : vector<8x128xf32> to vector<8x128xbf16>
    %cst_10 = arith.constant dense<0.000000e+00> : vector<8x128xf32>
    %12 = tpu.matmul %11, %9, %cst_10 {dimension_numbers = #tpu.dot_dimension_numbers<[1], [0], [0], [1], [0, 0, 1, 1], [], []>} : vector<8x128xbf16>, vector<128x128xbf16>, vector<8x128xf32> -> vector<8x128xf32>
    %13 = vector.broadcast %10 : vector<1x128xf32> to vector<8x128xf32>
    %14 = arith.addf %12, %13 : vector<8x128xf32>
    %cst_11 = arith.constant 0.000000e+00 : f32
    %15 = vector.broadcast %cst_11 : f32 to vector<8x128xf32>
    %16 = arith.maximumf %14, %15 : vector<8x128xf32>
    %17 = arith.truncf %16 : vector<8x128xf32> to vector<8x128xbf16>
    %cst_12 = arith.constant dense<0.000000e+00> : vector<8x128xf32>
    %18 = tpu.matmul %17, %9, %cst_12 {dimension_numbers = #tpu.dot_dimension_numbers<[1], [0], [0], [1], [0, 0, 1, 1], [], []>} : vector<8x128xbf16>, vector<128x128xbf16>, vector<8x128xf32> -> vector<8x128xf32>
    %19 = vector.broadcast %10 : vector<1x128xf32> to vector<8x128xf32>
    %20 = arith.addf %18, %19 : vector<8x128xf32>
    %cst_13 = arith.constant 0.000000e+00 : f32
    %21 = vector.broadcast %cst_13 : f32 to vector<8x128xf32>
    %22 = arith.maximumf %20, %21 : vector<8x128xf32>
    %23 = arith.truncf %22 : vector<8x128xf32> to vector<8x128xbf16>
    %c0_14 = arith.constant 0 : index
    %c0_15 = arith.constant 0 : index
    %24 = vector.load %arg6[%c0_14, %c0_15] : memref<128x128xbf16, #tpu.memory_space<vmem>>, vector<128x128xbf16>
    %cst_16 = arith.constant dense<0.000000e+00> : vector<8x128xf32>
    %25 = tpu.matmul %23, %24, %cst_16 {dimension_numbers = #tpu.dot_dimension_numbers<[1], [0], [0], [1], [0, 0, 1, 1], [], []>} : vector<8x128xbf16>, vector<128x128xbf16>, vector<8x128xf32> -> vector<8x128xf32>
    %c0_17 = arith.constant 0 : index
    %c0_18 = arith.constant 0 : index
    %26 = vector.load %arg7[%c0_17, %c0_18] : memref<1x128xf32, #tpu.memory_space<vmem>>, vector<1x128xf32>
    %27 = vector.broadcast %26 : vector<1x128xf32> to vector<8x128xf32>
    %28 = arith.addf %25, %27 : vector<8x128xf32>
    %cst_19 = arith.constant dense<0xFF800000> : vector<8xf32>
    %29 = vector.multi_reduction <maximumf>, %28, %cst_19 [1] : vector<8x128xf32> to vector<8xf32>
    %30 = vector.shape_cast %29 : vector<8xf32> to vector<8x1xf32>
    %31 = vector.broadcast %30 : vector<8x1xf32> to vector<8x128xf32>
    %32 = arith.subf %28, %31 : vector<8x128xf32>
    %33 = math.exp %32 : vector<8x128xf32>
    %cst_20 = arith.constant dense<0.000000e+00> : vector<8xf32>
    %34 = vector.multi_reduction <add>, %33, %cst_20 [1] : vector<8x128xf32> to vector<8xf32>
    %35 = vector.shape_cast %34 : vector<8xf32> to vector<8x1xf32>
    %36 = vector.broadcast %35 : vector<8x1xf32> to vector<8x128xf32>
    %37 = arith.divf %33, %36 : vector<8x128xf32>
    %c0_21 = arith.constant 0 : index
    %c0_22 = arith.constant 0 : index
    %38 = vector.load %arg8[%c0_21, %c0_22] : memref<8x128xf32, #tpu.memory_space<vmem>>, vector<8x128xf32>
    tpu.vector_store %arg8[%c0_21, %c0_22], %37 {strides = array<i32>} : memref<8x128xf32, #tpu.memory_space<vmem>>, vector<8x128xf32>,
    return
  }
  func.func @transform_0(%arg0: i32) -> (i32, i32) {
    %c0_i32 = arith.constant 0 : i32
    %c0_i32_0 = arith.constant 0 : i32
    return %arg0, %c0_i32 : i32, i32
  }
  func.func @transform_1(%arg0: i32) -> (i32, i32) {
    %c0_i32 = arith.constant 0 : i32
    %c0_i32_0 = arith.constant 0 : i32
    %c0_i32_1 = arith.constant 0 : i32
    return %c0_i32, %c0_i32_0 : i32, i32
  }
  func.func @transform_2(%arg0: i32) -> (i32, i32) {
    %c0_i32 = arith.constant 0 : i32
    %c0_i32_0 = arith.constant 0 : i32
    %c0_i32_1 = arith.constant 0 : i32
    return %c0_i32, %c0_i32_0 : i32, i32
  }
  func.func @transform_3(%arg0: i32) -> (i32, i32) {
    %c0_i32 = arith.constant 0 : i32
    %c0_i32_0 = arith.constant 0 : i32
    %c0_i32_1 = arith.constant 0 : i32
    return %c0_i32, %c0_i32_0 : i32, i32
  }
  func.func @transform_4(%arg0: i32) -> (i32, i32) {
    %c0_i32 = arith.constant 0 : i32
    %c0_i32_0 = arith.constant 0 : i32
    %c0_i32_1 = arith.constant 0 : i32
    return %c0_i32, %c0_i32_0 : i32, i32
  }
  func.func @transform_5(%arg0: i32) -> (i32, i32) {
    %c0_i32 = arith.constant 0 : i32
    %c0_i32_0 = arith.constant 0 : i32
    %c0_i32_1 = arith.constant 0 : i32
    return %c0_i32, %c0_i32_0 : i32, i32
  }
  func.func @transform_6(%arg0: i32) -> (i32, i32) {
    %c0_i32 = arith.constant 0 : i32
    %c0_i32_0 = arith.constant 0 : i32
    %c0_i32_1 = arith.constant 0 : i32
    return %c0_i32, %c0_i32_0 : i32, i32
  }
  func.func @transform_7(%arg0: i32) -> (i32, i32) {
    %c0_i32 = arith.constant 0 : i32
    %c0_i32_0 = arith.constant 0 : i32
    return %arg0, %c0_i32 : i32, i32
  }
}

</mosaic_0001>

<bundles_post_ra>
// kernel: tpu_custom_call.1
= control target key start
LH: loop header
LB: loop body
LE: loop exit
PB: predicated region body
PF: predicated region fallthrough
CT: control target
= control target key end

     0   :  { %12 = vsyncpa [#allocation3], 0  ;;  %s1539_s0 = inlined_call_operand.hbm [shape: f32[8,784], index: 0, kind: input, shape index: {}]   ;;  %s1540_s1 = inlined_call_operand.hbm [shape: bf16[784,128], index: 1, kind: input, shape index: {}]   ;;  %s1541_s2 = inlined_call_operand.vmem [shape: f32[1,128], index: 2, kind: input, shape index: {}]   ;;  %s1542_s3 = inlined_call_operand.hbm [shape: bf16[128,128], index: 3, kind: input, shape index: {}]   ;;  %s1543_s4 = inlined_call_operand.vmem [shape: f32[1,128], index: 4, kind: input, shape index: {}]   ;;  %s1544_s5 = inlined_call_operand.hbm [shape: bf16[128,128], index: 5, kind: input, shape index: {}]   ;;  %s1545_s6 = inlined_call_operand.vmem [shape: f32[1,128], index: 6, kind: input, shape index: {}]   ;;  %s1546_s7 = inlined_call_operand.hbm [shape: f32[8,128], index: 7, kind: output, shape index: {}]  }
   0x1   :  { %13 = vsyncpa [#allocation6], 0 }
   0x2   :  { %14 = vsyncpa [#allocation9], 0 }
   0x3   :  { %15 = vsyncpa [#allocation4], 0  ;;  %s1379_s24 = smov [#allocation5]   ;;  %s1261_s28 = scalar_lea.hbm %s1540_s1, 6272 }
   0x4   :  { %s31_s25 = sshll.u32 %s1379_s24, 4  ;;  %p1262_p0 = scmp.ne.s32.totalorder %s1540_s1, %s1261_s28  ;;  %s32_s25 = int_to_ptr.vmem [resolvable:$true] %s31_s25 }
   0x5   :  { %p1265_p1 = scmp.lt.u32.totalorder %s1261_s28, %s1540_s1 }
   0x7   :  { %p1267_p2 = pnand %p1265_p1, %p1262_p0 }
   0x9   :  { %1270 = shalt.err (!%p1267_p2)
}
   0xa   :  { %s1271_s10 = scalar_lea.vmem %s32_s25, 6272  ;;  %p1276_p4 = scmp.lt.s32.totalorder %s32_s25, %s32_s25 }
   0xb   :  { %p1272_p3 = scmp.ne.s32.totalorder %s32_s25, %s1271_s10  ;;  %p1277_p5 = scmp.lt.s32.totalorder %s1271_s10, %s1271_s10 }
   0xd   :  { %p1278_p6 = por %p1277_p5, %p1276_p4 }
   0xf   :  { %p1279_p7 = pnand %p1278_p6, %p1272_p3 }
  0x11   :  { %1282 = shalt.err (!%p1279_p7)
}
  0x12   :  { %s1380_s11 = smov 64   ;;  %s1381_s12 = smov 4  }
  0x13   :  { %37 = dma.hbm_to_vmem [thread:$0]  %s1540_s1, 6272, %s32_s25, [#allocation6], %s1380_s11, %s1380_s11, %s1381_s12  }
  0x14   :  { %s1382_s15 = smov [#allocation2]   ;;  %s1383_s17 = smov [#allocation7]  }
  0x15   :  { %s22_s16 = sshll.u32 %s1382_s15, 4  ;;  %s45_s18 = sshll.u32 %s1383_s17, 4  ;;  %s23_s16 = int_to_ptr.vmem [resolvable:$true] %s22_s16  ;;  %s46_s18 = int_to_ptr.vmem [resolvable:$true] %s45_s18 }
  0x16   :  { %s1283_s21 = scalar_lea.hbm %s1539_s0, 896 }
  0x17   :  { %p1284_p8 = scmp.ne.s32.totalorder %s1539_s0, %s1283_s21  ;;  %p1287_p9 = scmp.lt.u32.totalorder %s1283_s21, %s1539_s0 }
  0x19   :  { %p1289_p10 = pnand %p1287_p9, %p1284_p8 }
  0x1b   :  { %1292 = shalt.err (!%p1289_p10)
}
  0x1c   :  { %s1293_s1 = scalar_lea.vmem %s23_s16, 896  ;;  %p1298_p12 = scmp.lt.s32.totalorder %s23_s16, %s23_s16 }
  0x1d   :  { %p1294_p11 = scmp.ne.s32.totalorder %s23_s16, %s1293_s1  ;;  %p1299_p13 = scmp.lt.s32.totalorder %s1293_s1, %s1293_s1 }
  0x1f   :  { %p1300_p0 = por %p1299_p13, %p1298_p12 }
  0x21   :  { %p1301_p1 = pnand %p1300_p0, %p1294_p11 }
  0x23   :  { %1304 = shalt.err (!%p1301_p1)
}
  0x24   :  { %25 = dma.hbm_to_vmem [thread:$0]  %s1539_s0, 896, %s23_s16, [#allocation3]  }
  0x25   :  { %s1305_s30 = scalar_lea.hbm %s1542_s3, 1024 }
  0x26   :  { %p1306_p2 = scmp.ne.s32.totalorder %s1542_s3, %s1305_s30  ;;  %p1309_p3 = scmp.lt.u32.totalorder %s1305_s30, %s1542_s3 }
  0x28   :  { %p1311_p4 = pnand %p1309_p3, %p1306_p2 }
  0x2a   :  { %1314 = shalt.err (!%p1311_p4)
}
  0x2b   :  { %s1315_s14 = scalar_lea.vmem %s46_s18, 1024  ;;  %p1320_p6 = scmp.lt.s32.totalorder %s46_s18, %s46_s18 }
  0x2c   :  { %p1316_p5 = scmp.ne.s32.totalorder %s46_s18, %s1315_s14  ;;  %p1321_p7 = scmp.lt.s32.totalorder %s1315_s14, %s1315_s14 }
  0x2e   :  { %p1322_p8 = por %p1321_p7, %p1320_p6 }
  0x30   :  { %p1323_p9 = pnand %p1322_p8, %p1316_p5 }
  0x32   :  { %1326 = shalt.err (!%p1323_p9)
}
  0x33   :  { %51 = dma.hbm_to_vmem [thread:$0]  %s1542_s3, 1024, %s46_s18, [#allocation6], %s1380_s11, %s1380_s11, %s1381_s12  }
  0x34   :  { %s1384_s16 = smov [#allocation8]   ;;  %s1327_s21 = scalar_lea.hbm %s1544_s5, 1024 }
  0x35   :  { %s59_s17 = sshll.u32 %s1384_s16, 4  ;;  %p1328_p10 = scmp.ne.s32.totalorder %s1544_s5, %s1327_s21  ;;  %s60_s17 = int_to_ptr.vmem [resolvable:$true] %s59_s17 }
  0x36   :  { %p1331_p11 = scmp.lt.u32.totalorder %s1327_s21, %s1544_s5 }
  0x38   :  { %p1333_p12 = pnand %p1331_p11, %p1328_p10 }
  0x3a   :  { %1336 = shalt.err (!%p1333_p12)
}
  0x3b   :  { %s1337_s1 = scalar_lea.vmem %s60_s17, 1024  ;;  %p1342_p0 = scmp.lt.s32.totalorder %s60_s17, %s60_s17 }
  0x3c   :  { %p1338_p13 = scmp.ne.s32.totalorder %s60_s17, %s1337_s1  ;;  %p1343_p1 = scmp.lt.s32.totalorder %s1337_s1, %s1337_s1 }
  0x3e   :  { %p1344_p2 = por %p1343_p1, %p1342_p0 }
  0x40   :  { %p1345_p3 = pnand %p1344_p2, %p1338_p13 }
  0x42   :  { %1348 = shalt.err (!%p1345_p3)
}
  0x43   :  { %65 = dma.hbm_to_vmem [thread:$0]  %s1544_s5, 1024, %s60_s17, [#allocation9], %s1380_s11, %s1380_s11, %s1381_s12  }
  0x44   :  { %1371 = dma.done.wait [#allocation3], 896  }
  0x45   :  { %1372 = vsyncadd [#allocation3], 4294966400 }
  0x46   :  { %1373 = dma.done.wait [#allocation6], 7296  }
  0x47   :  { %1374 = vsyncadd [#allocation6], 4294960000 }
  0x48   :  { %1375 = dma.done.wait [#allocation9], 1024  }
  0x49   :  { %1376 = vsyncadd [#allocation9], 4294966272  ;;  %v1192_v0 = vld [vmem:[#allocation5 + $0x40] sm:$0xff]   ;;  %v1196_v4 = vld [vmem:[#allocation5 + $0x48] sm:$0xff]   ;;  %v1385_v44 = vmov 0.0   ;;  %vm1386_vm0 = vmmov 0  }
  0x4a   :  { %v1193_v1 = vld [vmem:[#allocation5] sm:$0xff]   ;;  %1022 = vmatprep.subr.bf16.mxu0 %v1192_v0  ;;  %v1197_v5 = vld [vmem:[#allocation5 + $0x8] sm:$0xff]   ;;  %v1200_v8 = vld [vmem:[#allocation5 + $0x50] sm:$0xff]   ;;  %vm494_vm1 = vcmask 130048   ;;  %s1387_s27 = smov [#allocation10]  }
  0x4b   :  { %v1194_v2 = vld [vmem:[#allocation5 + $0xc0] sm:$0xff]   ;;  %1023 = vmatpush3.bf16.msra.mxu0 %v1193_v1  ;;  %v1198_v6 = vld [vmem:[#allocation5 + $0xc8] sm:$0xff]   ;;  %v1201_v9 = vld [vmem:[#allocation5 + $0x10] sm:$0xff]   ;;  %s942_s28 = sshll.u32 %s1387_s27, 4  ;;  %s943_s28 = int_to_ptr.vmem [resolvable:$true] %s942_s28 }
  0x4c   :  { %v1195_v3 = vld [vmem:[#allocation5 + $0x80] sm:$0xff]   ;;  %1044 = vmatprep.subr.bf16.mxu1 %v1194_v2  ;;  %1024 = vmatprep.subr.bf16.mxu0 %v1196_v4  ;;  %v1199_v7 = vld [vmem:[#allocation5 + $0x88] sm:$0xff]   ;;  %v1202_v10 = vld [vmem:[#allocation5 + $0xd0] sm:$0xff]   ;;  %p1354_p5 = scmp.lt.s32.totalorder %s943_s28, %s943_s28 }
  0x4d   :  { %1045 = vmatpush3.bf16.msra.mxu1 %v1195_v3  ;;  %v1203_v11 = vld [vmem:[#allocation5 + $0x90] sm:$0xff]   ;;  %v1204_v12 = vld [vmem:[#allocation5 + $0x58] sm:$0xff]   ;;  %v1208_v16 = vld [vmem:[#allocation5 + $0x60] sm:$0xff]  }
  0x4e   :  { %1046 = vmatprep.subr.bf16.mxu1 %v1198_v6  ;;  %v1205_v13 = vld [vmem:[#allocation5 + $0x18] sm:$0xff]   ;;  %v1209_v17 = vld [vmem:[#allocation5 + $0x20] sm:$0xff]   ;;  %v1212_v20 = vld [vmem:[#allocation5 + $0x68] sm:$0xff]  }
  0x4f   :  { %1025 = vmatpush3.bf16.msra.mxu0 %v1197_v5  ;;  %v1206_v14 = vld [vmem:[#allocation5 + $0xd8] sm:$0xff]   ;;  %v1210_v18 = vld [vmem:[#allocation5 + $0xe0] sm:$0xff]   ;;  %v1213_v21 = vld [vmem:[#allocation5 + $0x28] sm:$0xff]  }
  0x50   :  { %1026 = vmatprep.subr.bf16.mxu0 %v1200_v8  ;;  %v1207_v15 = vld [vmem:[#allocation5 + $0x98] sm:$0xff]   ;;  %v1211_v19 = vld [vmem:[#allocation5 + $0xa0] sm:$0xff]   ;;  %v1214_v22 = vld [vmem:[#allocation5 + $0xe8] sm:$0xff]  }
  0x51   :  { %1047 = vmatpush3.bf16.msra.mxu1 %v1199_v7  ;;  %v1215_v23 = vld [vmem:[#allocation5 + $0xa8] sm:$0xff]   ;;  %v1216_v24 = vld [vmem:[#allocation5 + $0x70] sm:$0xff]   ;;  %v1220_v28 = vld [vmem:[#allocation5 + $0x78] sm:$0xff]  }
  0x52   :  { %1048 = vmatprep.subr.bf16.mxu1 %v1202_v10  ;;  %v1217_v25 = vld [vmem:[#allocation5 + $0x30] sm:$0xff]   ;;  %v1221_v29 = vld [vmem:[#allocation5 + $0x38] sm:$0xff]   ;;  %v81_v34 = vld [vmem:[#allocation2] sm:$0xff] }
  0x53   :  { %1027 = vmatpush3.bf16.msra.mxu0 %v1201_v9  ;;  %v1218_v26 = vld [vmem:[#allocation5 + $0xf0] sm:$0xff]   ;;  %v1222_v30 = vld [vmem:[#allocation5 + $0xf8] sm:$0xff]   ;;  %v88_v35 = vpack.c.bf16 %v81_v34, %v81_v34  ;;  %v1224_v36 = vld [vmem:[#allocation5 + $0x140] sm:$0xff]  }
  0x54   :  { %1028 = vmatprep.subr.bf16.mxu0 %v1204_v12  ;;  %v1219_v27 = vld [vmem:[#allocation5 + $0xb0] sm:$0xff]   ;;  %v1223_v33 = vld [vmem:[#allocation5 + $0xb8] sm:$0xff]   ;;  %v84_v37 = vld [vmem:[#allocation2 + $0x18] sm:$0xff] }
  0x55   :  { %1049 = vmatpush3.bf16.msra.mxu1 %v1203_v11  ;;  %v82_v31 = vld [vmem:[#allocation2 + $0x8] sm:$0xff]  ;;  %v91_v38 = vpack.c.bf16 %v84_v37, %v84_v37  ;;  %v1225_v39 = vld [vmem:[#allocation5 + $0x100] sm:$0xff]   ;;  %v83_v40 = vld [vmem:[#allocation2 + $0x10] sm:$0xff] }
  0x56   :  { %1050 = vmatprep.subr.bf16.mxu1 %v1206_v14  ;;  %v89_v32 = vpack.c.bf16 %v82_v31, %v82_v31  ;;  %v90_v41 = vpack.c.bf16 %v83_v40, %v83_v40  ;;  %v1226_v42 = vld [vmem:[#allocation5 + $0x148] sm:$0xff]   ;;  %v1228_v45 = vld [vmem:[#allocation5 + $0x150] sm:$0xff]   ;;  %v1230_v47 = vld [vmem:[#allocation5 + $0x158] sm:$0xff]  }
  0x57   :  { %1029 = vmatpush3.bf16.msra.mxu0 %v1205_v13  ;;  %570 = vmatprep.mubr.bf16.mxu1 %v91_v38  ;;  %v1227_v43 = vld [vmem:[#allocation5 + $0x108] sm:$0xff]   ;;  %v1229_v46 = vld [vmem:[#allocation5 + $0x110] sm:$0xff]   ;;  %v1231_v48 = vld [vmem:[#allocation5 + $0x118] sm:$0xff]  }
  0x58   :  { %1030 = vmatprep.subr.bf16.mxu0 %v1208_v16  ;;  %530 = vmatprep.mubr.bf16.mxu0 %v89_v32  ;;  %v1232_v49 = vld [vmem:[#allocation5 + $0x160] sm:$0xff]   ;;  %v1234_v51 = vld [vmem:[#allocation5 + $0x168] sm:$0xff]   ;;  %v86_v54 = vld [vmem:[#allocation2 + $0x28] sm:$0xff] }
  0x59   :  { %1051 = vmatpush3.bf16.msra.mxu1 %v1207_v15  ;;  %v1233_v50 = vld [vmem:[#allocation5 + $0x120] sm:$0xff]   ;;  %v1235_v52 = vld [vmem:[#allocation5 + $0x128] sm:$0xff]   ;;  %v1236_v55 = vld [vmem:[#allocation5 + $0x170] sm:$0xff]   ;;  %v93_v56 = vpack.c.bf16 %v86_v54, %v86_v54 }
  0x5a   :  { %1052 = vmatprep.subr.bf16.mxu1 %v1210_v18  ;;  %v1240_v53 = vld [vmem:[#allocation5 + $0x180] sm:$0xff]   ;;  %v87_v57 = vld [vmem:[#allocation2 + $0x30] sm:$0xff]  ;;  %v1237_v59 = vld [vmem:[#allocation5 + $0x130] sm:$0xff]  }
  0x5b   :  { %1031 = vmatpush3.bf16.msra.mxu0 %v1209_v17  ;;  %v94_v58 = vpack.c.bf16 %v87_v57, %v87_v57  ;;  %v1238_v60 = vld [vmem:[#allocation5 + $0x178] sm:$0xff]   ;;  %v85_v62 = vld [vmem:[#allocation2 + $0x20] sm:$0xff]  ;;  %v1242_v1 = vld [vmem:[#allocation7 + $0x8] sm:$0xff]  }
  0x5c   :  { %1032 = vmatprep.subr.bf16.mxu0 %v1212_v20  ;;  %v1239_v61 = vld [vmem:[#allocation5 + $0x138] sm:$0xff]   ;;  %v92_v63 = vpack.c.bf16 %v85_v62, %v85_v62  ;;  %v1241_v0 = vld [vmem:[#allocation7] sm:$0xff]   ;;  %v1244_v3 = vld [vmem:[#allocation7 + $0x18] sm:$0xff]  }
  0x5d   :  { %1053 = vmatpush3.bf16.msra.mxu1 %v1211_v19  ;;  %v1243_v2 = vld [vmem:[#allocation7 + $0x10] sm:$0xff]   ;;  %v1245_v4 = vld [vmem:[#allocation7 + $0x20] sm:$0xff]   ;;  %v1246_v5 = vld [vmem:[#allocation7 + $0x28] sm:$0xff]  }
  0x5e   :  { %1054 = vmatprep.subr.bf16.mxu1 %v1214_v22  ;;  %v1247_v6 = vld [vmem:[#allocation7 + $0x30] sm:$0xff]   ;;  %v1248_v7 = vld [vmem:[#allocation7 + $0x38] sm:$0xff]   ;;  %v953_v9 = vld [vmem:[%s1541_s2] ss:$0 sm:$0xff] }
  0x5f   :  { %1033 = vmatpush3.bf16.msra.mxu0 %v1213_v21  ;;  %v1249_v34 = vld [vmem:[#allocation8] sm:$0xff]   ;;  %v1252_v37 = vld [vmem:[#allocation8 + $0x18] sm:$0xff]  }
  0x60   :  { %1034 = vmatprep.subr.bf16.mxu0 %v1216_v24  ;;  %v1253_v38 = vld [vmem:[#allocation8 + $0x20] sm:$0xff]  }
  0x61   :  { %1055 = vmatpush3.bf16.msra.mxu1 %v1215_v23  ;;  %v1004_v40 = vld [vmem:[%s1543_s4] ss:$0 sm:$0xff] }
  0x62   :  { %1056 = vmatprep.subr.bf16.mxu1 %v1218_v26 }
  0x63   :  { %1035 = vmatpush3.bf16.msra.mxu0 %v1217_v25 }
  0x64   :  { %1036 = vmatprep.subr.bf16.mxu0 %v1220_v28 }
  0x65   :  { %1057 = vmatpush3.bf16.msra.mxu1 %v1219_v27 }
  0x66   :  { %1058 = vmatprep.subr.bf16.mxu1 %v1222_v30 }
  0x67   :  { %1037 = vmatpush3.bf16.msra.mxu0 %v1221_v29 }
  0x68   :  { %1066 = vmatprep.subr.bf16.mxu0 %v1224_v36  ;;  %v1251_v36 = vld [vmem:[#allocation8 + $0x10] sm:$0xff]  }
  0x69   :  { %1059 = vmatpush3.bf16.msra.mxu1 %v1223_v33 }
  0x6a   :  { %531 = vmatmul.mubr.bf16.vlgmr.msra.gmra.mrb[0].mxu0 %v88_v35  ;;  %1117 = vmatprep.subr.bf16.mxu1 %v1385_v44  ;;  %v1250_v35 = vld [vmem:[#allocation8 + $0x8] sm:$0xff]  }
  0x6b   :  { %1067 = vmatpush3.bf16.msra.mxu0 %v1225_v39  ;;  %610 = vmatprep.mubr.bf16.mxu0 %v93_v56  ;;  %v1254_v39 = vld [vmem:[#allocation8 + $0x28] sm:$0xff]  }
  0x6c   :  { %571 = vmatmul.mubr.bf16.vlgmr.msra.gmra.mrb[0].mxu1 %v90_v41  ;;  %1068 = vmatprep.subr.bf16.mxu0 %v1226_v42 }
  0x6d   :  { %1119 = vmatprep.mubr.msk.bf16.mxu1 %vm1386_vm0, %v1385_v44  ;;  %1118 = vmatpush3.bf16.msra.mxu1 %v1240_v53 }
  0x6e   :  { %1123 = vmatprep.subr.bf16.mxu1 %v1385_v44 }
  0x6f   :  { %1069 = vmatpush3.bf16.msra.mxu0 %v1227_v43 }
  0x70   :  { %1070 = vmatprep.subr.bf16.mxu0 %v1228_v45 }
  0x73   :  { %1071 = vmatpush3.bf16.msra.mxu0 %v1229_v46 }
  0x74   :  { %1072 = vmatprep.subr.bf16.mxu0 %v1230_v47  ;;  %1120 = vmatmul.mubr.msk.bf16.vlgmr.msra.gmra.mrb[4].mxu1 %vm494_vm1, %v94_v58  ;;  %v1013_v58 = vld [vmem:[%s1545_s6] ss:$0 sm:$0xff]  ;;  %s1349_s6 = scalar_lea.vmem %s943_s28, 128 }
  0x75   :  { %1139 = vmatprep.mubr.msk.bf16.mxu1 %vm1386_vm0, %v1385_v44  ;;  %1124 = vmatpush3.bf16.msra.mxu1 %v1241_v0  ;;  %p1350_p4 = scmp.ne.s32.totalorder %s943_s28, %s1349_s6  ;;  %p1355_p6 = scmp.lt.s32.totalorder %s1349_s6, %s1349_s6 }
  0x76   :  { %1125 = vmatprep.subr.bf16.mxu1 %v1385_v44 }
  0x77   :  { %1073 = vmatpush3.bf16.msra.mxu0 %v1231_v48  ;;  %p1356_p7 = por %p1355_p6, %p1354_p5 }
  0x78   :  { %1074 = vmatprep.subr.bf16.mxu0 %v1232_v49  ;;  %v1255_v49 = vld [vmem:[#allocation8 + $0x30] sm:$0xff]  }
  0x79   :  { %1126 = vmatpush3.bf16.msra.mxu1 %v1242_v1  ;;  %p1357_p8 = pnand %p1356_p7, %p1350_p4 }
  0x7a   :  { %1127 = vmatprep.subr.bf16.mxu1 %v1385_v44 }
  0x7b   :  { %1075 = vmatpush3.bf16.msra.mxu0 %v1233_v50  ;;  %v1256_v50 = vld [vmem:[#allocation8 + $0x38] sm:$0xff]  }
  0x7c   :  { %1076 = vmatprep.subr.bf16.mxu0 %v1234_v51 }
  0x7d   :  { %1128 = vmatpush3.bf16.msra.mxu1 %v1243_v2 }
  0x7e   :  { %1129 = vmatprep.subr.bf16.mxu1 %v1385_v44 }
  0x7f   :  { %1077 = vmatpush3.bf16.msra.mxu0 %v1235_v52 }
  0x80   :  { %1078 = vmatprep.subr.bf16.mxu0 %v1236_v55 }
  0x81   :  { %1130 = vmatpush3.bf16.msra.mxu1 %v1244_v3 }
  0x82   :  { %1131 = vmatprep.subr.bf16.mxu1 %v1385_v44 }
  0x83   :  { %1079 = vmatpush3.bf16.msra.mxu0 %v1237_v59 }
  0x84   :  { %1080 = vmatprep.subr.bf16.mxu0 %v1238_v60 }
  0x85   :  { %1132 = vmatpush3.bf16.msra.mxu1 %v1245_v4 }
  0x86   :  { %1133 = vmatprep.subr.bf16.mxu1 %v1385_v44 }
  0x87   :  { %1081 = vmatpush3.bf16.msra.mxu0 %v1239_v61 }
  0x88   :  { %1143 = vmatprep.subr.bf16.mxu0 %v1385_v44 }
  0x89   :  { %1134 = vmatpush3.bf16.msra.mxu1 %v1246_v5 }
  0x8a   :  { %611 = vmatmul.mubr.bf16.vlgmr.msra.gmra.mrb[4].mxu0 %v92_v63  ;;  %1135 = vmatprep.subr.bf16.mxu1 %v1385_v44 }
  0x8b   :  { %1159 = vmatprep.mubr.msk.bf16.mxu0 %vm1386_vm0, %v1385_v44  ;;  %1144 = vmatpush3.bf16.msra.mxu0 %v1241_v0 }
  0x8c   :  { %1145 = vmatprep.subr.bf16.mxu0 %v1385_v44 }
  0x8d   :  { %1136 = vmatpush3.bf16.msra.mxu1 %v1247_v6 }
  0x8e   :  { %1137 = vmatprep.subr.bf16.mxu1 %v1385_v44 }
  0x8f   :  { %1146 = vmatpush3.bf16.msra.mxu0 %v1242_v1 }
  0x90   :  { %1147 = vmatprep.subr.bf16.mxu0 %v1385_v44 }
  0x91   :  { %1138 = vmatpush3.bf16.msra.mxu1 %v1248_v7 }
  0x92   :  { %1163 = vmatprep.subr.bf16.mxu1 %v1385_v44 }
  0x93   :  { %1148 = vmatpush3.bf16.msra.mxu0 %v1243_v2 }
  0x94   :  { %1149 = vmatprep.subr.bf16.mxu0 %v1385_v44 }
  0x97   :  { %1150 = vmatpush3.bf16.msra.mxu0 %v1244_v3 }
  0x98   :  { %1151 = vmatprep.subr.bf16.mxu0 %v1385_v44 }
  0x9b   :  { %1152 = vmatpush3.bf16.msra.mxu0 %v1245_v4 }
  0x9c   :  { %1153 = vmatprep.subr.bf16.mxu0 %v1385_v44 }
  0x9f   :  { %1154 = vmatpush3.bf16.msra.mxu0 %v1246_v5 }
  0xa0   :  { %1155 = vmatprep.subr.bf16.mxu0 %v1385_v44 }
  0xa3   :  { %1156 = vmatpush3.bf16.msra.mxu0 %v1247_v6 }
  0xa4   :  { %1157 = vmatprep.subr.bf16.mxu0 %v1385_v44 }
  0xa7   :  { %1158 = vmatpush3.bf16.msra.mxu0 %v1248_v7 }
 0x13d   :  { %v1038_v8 = vpop.f32.mrb[0].mxu0 }
 0x13e   :  { %v1039_v10 = vpop.f32.mrb[1].mxu0 }
 0x13f   :  { %v1040_v11 = vadd.f32 %v1039_v10, %v1038_v8  ;;  %v1041_v12 = vpop.f32.mrb[2].mxu0  ;;  %v1060_v13 = vpop.f32.mrb[0].mxu1 }
 0x140   :  { %v1042_v14 = vpop.f32.mrb[3].mxu0  ;;  %v1061_v16 = vpop.f32.mrb[1].mxu1 }
 0x141   :  { %v533_v15 = vadd.f32 %v1040_v11, %v953_v9  ;;  %v1062_v17 = vadd.f32 %v1061_v16, %v1060_v13  ;;  %v1063_v18 = vpop.f32.mrb[2].mxu1 }
 0x142   :  { %v1064_v19 = vpop.f32.mrb[3].mxu1 }
 0x143   :  { %v573_v20 = vadd.f32 %v1062_v17, %v533_v15 }
 0x147   :  { %v652_v21 = vpop.f32.mrb[4].mxu1 }
 0x148   :  { %v1121_v22 = vpop.f32.mrb[5].mxu1 }
 0x149   :  { %v655_v23 = vpop.f32.mrb[6].mxu1 }
 0x14a   :  { %v1122_v24 = vpop.f32.mrb[7].mxu1 }
 0x15d   :  { %v1082_v25 = vpop.f32.mrb[4].mxu0 }
 0x15e   :  { %v1083_v26 = vpop.f32.mrb[5].mxu0 }
 0x15f   :  { %v1084_v27 = vadd.f32 %v1083_v26, %v1082_v25  ;;  %v1085_v28 = vpop.f32.mrb[6].mxu0 }
 0x160   :  { %v1086_v29 = vpop.f32.mrb[7].mxu0 }
 0x161   :  { %v613_v30 = vadd.f32 %v1084_v27, %v573_v20 }
 0x163   :  { %v653_v31 = vadd.f32 %v652_v21, %v613_v30 }
 0x165   :  { %v658_v32 = vmax.f32 %v653_v31, 0.0 }
 0x167   :  { %v676_v33 = vpack.c.bf16 %v658_v32, %v658_v32 }
 0x169   :  { %1140 = vmatmul.mubr.bf16.vlgmr.msra.gmra.mrb[8].mxu1 %v676_v33 }
 0x16a   :  { %1179 = vmatprep.mubr.msk.bf16.mxu1 %vm1386_vm0, %v1385_v44  ;;  %1164 = vmatpush3.bf16.msra.mxu1 %v1249_v34 }
 0x16b   :  { %1165 = vmatprep.subr.bf16.mxu1 %v1385_v44 }
 0x16e   :  { %1166 = vmatpush3.bf16.msra.mxu1 %v1250_v35 }
 0x16f   :  { %1167 = vmatprep.subr.bf16.mxu1 %v1385_v44 }
 0x172   :  { %1168 = vmatpush3.bf16.msra.mxu1 %v1251_v36 }
 0x173   :  { %1169 = vmatprep.subr.bf16.mxu1 %v1385_v44 }
 0x176   :  { %1170 = vmatpush3.bf16.msra.mxu1 %v1252_v37 }
 0x177   :  { %1171 = vmatprep.subr.bf16.mxu1 %v1385_v44 }
 0x17a   :  { %1172 = vmatpush3.bf16.msra.mxu1 %v1253_v38 }
 0x17b   :  { %1173 = vmatprep.subr.bf16.mxu1 %v1385_v44 }
 0x17e   :  { %1174 = vmatpush3.bf16.msra.mxu1 %v1254_v39 }
 0x17f   :  { %1175 = vmatprep.subr.bf16.mxu1 %v1385_v44 }
 0x182   :  { %1176 = vmatpush3.bf16.msra.mxu1 %v1255_v49 }
 0x183   :  { %1177 = vmatprep.subr.bf16.mxu1 %v1385_v44 }
 0x186   :  { %1178 = vmatpush3.bf16.msra.mxu1 %v1256_v50 }
 0x23c   :  { %v765_v41 = vpop.f32.mrb[8].mxu1 }
 0x23d   :  { %v766_v42 = vadd.f32 %v1004_v40, %v765_v41  ;;  %v1141_v43 = vpop.f32.mrb[9].mxu1 }
 0x23e   :  { %v768_v45 = vpop.f32.mrb[10].mxu1 }
 0x23f   :  { %v771_v46 = vmax.f32 %v766_v42, 0.0  ;;  %v1142_v47 = vpop.f32.mrb[11].mxu1 }
 0x241   :  { %v772_v48 = vpack.c.bf16 %v771_v46, %v771_v46 }
 0x243   :  { %1160 = vmatmul.mubr.bf16.vlgmr.msra.gmra.mrb[8].mxu0 %v772_v48 }
 0x316   :  { %v807_v51 = vpop.f32.mrb[8].mxu0 }
 0x317   :  { %v808_v52 = vadd.f32 %v1004_v40, %v807_v51  ;;  %v1161_v53 = vpop.f32.mrb[9].mxu0 }
 0x318   :  { %v810_v54 = vpop.f32.mrb[10].mxu0 }
 0x319   :  { %v813_v55 = vmax.f32 %v808_v52, 0.0  ;;  %v1162_v56 = vpop.f32.mrb[11].mxu0 }
 0x31b   :  { %v814_v57 = vpack.c.bf16 %v813_v55, %v813_v55 }
 0x31d   :  { %1180 = vmatmul.mubr.bf16.vlgmr.msra.gmra.mrb[12].mxu1 %v814_v57 }
 0x3f0   :  { %v920_v59 = vpop.f32.mrb[12].mxu1 }
 0x3f1   :  { %v921_v60 = vadd.f32 %v1013_v58, %v920_v59  ;;  %v1181_v61 = vpop.f32.mrb[13].mxu1 }
 0x3f2   :  { %v923_v62 = vpop.f32.mrb[14].mxu1 }
 0x3f3   :  { %926 = vmax.xlane.f32.xlu0 %v921_v60  ;;  %v1182_v44 = vpop.f32.mrb[15].mxu1 }
 0x480   :  { %v927_v63 = vpop.xlane.xlu0 %926 }
 0x481   :  { %v928_v0 = vsub.f32 %v921_v60, %v927_v63 }
 0x483   :  { %v929_v1 = vmul.f32 1.442695, %v928_v0 }
 0x485   :  { %1257 = vpow2.f32 %v929_v1 }
 0x48f   :  { %v1258_v2 = vpop.eup %1257 }
 0x490   :  { %931 = vadd.xlane.f32.xlu0 %v1258_v2 }
 0x51d   :  { %v932_v3 = vpop.xlane.xlu0 %931 }
 0x51e   :  { %1259 = vrcp.f32 %v932_v3 }
 0x528   :  { %v1260_v4 = vpop.eup %1259 }
 0x529   :  { %v934_v5 = vmul.f32 %v1260_v4, %v1258_v2 }
 0x52b   :  { %935 = vst [vmem:[#allocation10] sm:$0xff] %v934_v5 }
 0x52c   :  { %1360 = shalt.err (!%p1357_p8)
}
 0x52d   :  { %s1361_s8 = scalar_lea.hbm %s1546_s7, 128 }
 0x52e   :  { %p1362_p9 = scmp.ne.s32.totalorder %s1546_s7, %s1361_s8  ;;  %p1365_p10 = scmp.lt.u32.totalorder %s1361_s8, %s1546_s7 }
 0x530   :  { %p1367_p11 = pnand %p1365_p10, %p1362_p9 }
 0x532   :  { %1370 = shalt.err (!%p1367_p11)
}
 0x533   :  { %945 = dma.vmem_to_hbm [thread:$0]  %s943_s28, 128, %s1546_s7, [#allocation4]  }
 0x534   :  { %1377 = dma.done.wait [#allocation4], 128  }
 0x535   :  { %1378 = vsyncadd [#allocation4], 4294967168 }
 0x536   :  { %949 = vsyncpa [#allocation3], 1 }
 0x537   :  { %950 = vsyncpa [#allocation6], 1 }
 0x538   :  { %951 = vsyncpa [#allocation9], 1 }
 0x539   :  { %952 = vsyncpa [#allocation4], 1 }

</bundles_post_ra>
